<compile_context>
chip_gen: v6e
topology: v6e:2x2x1
jax: 0.10.0
libtpu: 0.0.40
codegen_flags: <defaults>
</compile_context>

<pallas_src>
import jax
import jax.numpy as jnp
from jax.experimental import pallas as pl
from jax.experimental.pallas import tpu as pltpu


def _round_up(n, m):
    return ((n + m - 1) // m) * m


def _cluster_head_kernel(x_ref, ct_ref, bias_ref, o_ref):
    # x_ref    : (TM, D)  row tile of inputs (f32 or bf16), streamed
    # ct_ref   : (D, K)   cluster centers transposed, grid-invariant (resident)
    # bias_ref : (1, K)   -0.5 * ||c_k||^2, grid-invariant (resident)
    # o_ref    : (TM, K)  per-row cluster probabilities (f32)
    logits = jnp.dot(x_ref[...], ct_ref[...],
                     preferred_element_type=jnp.float32) + bias_ref[...]
    # Numerically-stable softmax over clusters; mathematically identical to
    # exp(-||x - c||^2 / 2) followed by row normalization.
    m = jnp.max(logits, axis=-1, keepdims=True)
    e = jnp.exp(logits - m)
    o_ref[...] = (e / jnp.sum(e, axis=-1, keepdims=True)).astype(o_ref.dtype)


def cluster_head(x, cluster_centers, *, tile_m=4096, input_dtype=None):
    """Soft cluster assignment probabilities.

    x: (M, D) float. cluster_centers: (K, D) float. Returns (M, K) float32.
    input_dtype: optionally jnp.bfloat16 to halve the HBM traffic of the
      dominant x stream (accuracy impact confined to the distance term;
      accumulation, exp and normalization stay in f32).
    """
    M, D = x.shape
    K, D2 = cluster_centers.shape
    assert D == D2, "projection_dim mismatch between x and cluster_centers"

    centers = cluster_centers.astype(jnp.float32)
    ct = jnp.transpose(centers)                                        # (D, K)
    bias = (-0.5 * jnp.sum(centers * centers, axis=-1)).reshape(1, K)  # (1, K)

    if input_dtype is not None:
        x = x.astype(input_dtype)
        ct = ct.astype(input_dtype)

    # Tile sizing: biggest useful tile, multiple of 8 (sublane), clamped to the
    # (rounded-up) batch; for large batches cap so the grid has >= 2 steps so
    # ("parallel",) can shard across v7x's two TensorCores.
    tile_m = max(8, min(tile_m, _round_up(M, 8)))
    if M >= 2048:
        tile_m = min(tile_m, _round_up(pl.cdiv(M, 2), 8))

    grid = (pl.cdiv(M, tile_m),)

    out = pl.pallas_call(
        _cluster_head_kernel,
        out_shape=jax.ShapeDtypeStruct((M, K), jnp.float32),
        grid=grid,
        in_specs=[
            pl.BlockSpec((tile_m, D), lambda i: (i, 0)),   # x row tile (streamed)
            pl.BlockSpec((D, K), lambda i: (0, 0)),        # centers^T (resident)
            pl.BlockSpec((1, K), lambda i: (0, 0)),        # -0.5||c||^2 (resident)
        ],
        out_specs=pl.BlockSpec((tile_m, K), lambda i: (i, 0)),
        compiler_params=pltpu.CompilerParams(
            dimension_semantics=("parallel",)),
    )(x, ct, bias)
    return out


def _reference(x, cluster_centers):
    # Literal translation of the PyTorch forward.
    diff = x[:, None, :] - cluster_centers[None, :, :]
    norm_squared = jnp.sum(diff * diff, axis=-1)
    similarities = jnp.exp(-norm_squared / 2)
    return similarities / jnp.sum(similarities, axis=1, keepdims=True)


if __name__ == "__main__":
    # Small shapes consistent with the module:
    #   batch = 20 (ragged vs. the tile -> exercises the masked last block),
    #   projection_dim = 128, num_clusters = 16.
    M, D, K = 20, 128, 16

    key = jax.random.PRNGKey(0)
    kx, kc = jax.random.split(key, 2)

    # Synthetic deterministic init (stands in for xavier_uniform_ centers);
    # scaled so squared distances stay in a well-conditioned range for exp.
    x = jax.random.normal(kx, (M, D), dtype=jnp.float32) * 0.3
    cluster_centers = jax.random.normal(kc, (K, D), dtype=jnp.float32) * 0.2

    # Default f32 path (ragged single-tile grid).
    probs = jax.block_until_ready(cluster_head(x, cluster_centers))
    ref = _reference(x, cluster_centers)
    assert probs.shape == (M, K)
    assert jnp.allclose(jnp.sum(probs, axis=-1), 1.0, atol=1e-5), "rows not normalized"
    assert jnp.allclose(probs, ref, atol=1e-4, rtol=1e-4), "mismatch vs reference"

    # Multi-step grid + ragged last block (no jnp.pad anywhere).
    M2 = 72
    x2 = jax.random.normal(jax.random.PRNGKey(1), (M2, D), dtype=jnp.float32) * 0.3
    probs2 = jax.block_until_ready(cluster_head(x2, cluster_centers, tile_m=32))
    ref2 = _reference(x2, cluster_centers)
    assert probs2.shape == (M2, K)
    assert jnp.allclose(probs2, ref2, atol=1e-4, rtol=1e-4), "multi-tile mismatch"

    # Opt-in bf16 input path (halved HBM traffic; looser tolerance expected).
    probs_bf16 = jax.block_until_ready(
        cluster_head(x, cluster_centers, input_dtype=jnp.bfloat16))
    assert jnp.allclose(probs_bf16, ref, atol=2e-2, rtol=2e-2), "bf16 path mismatch"

    print("KERNEL_OK")
</pallas_src>

<mosaic_0001>
module attributes {stable_mosaic.version = 11 : i64} {
  func.func @_cluster_head_kernel(%arg0: i32, %arg1: memref<24x128xf32, #tpu.memory_space<vmem>>, %arg2: memref<128x16xf32, #tpu.memory_space<vmem>>, %arg3: memref<1x16xf32, #tpu.memory_space<vmem>>, %arg4: memref<24x16xf32, #tpu.memory_space<vmem>>) attributes {dimension_semantics = [#tpu.dimension_semantics<parallel>], iteration_bounds = array<i64: 1>, scalar_prefetch = 0 : i64, scratch_operands = 0 : i64, tpu.core_type = #tpu.core_type<tc>, window_params = [{transform_indices = @transform_0, window_bounds = array<i64: 24, 128>}, {pipeline_mode = #tpu.pipeline_mode<synchronous>, transform_indices = @transform_1, window_bounds = array<i64: 128, 16>}, {pipeline_mode = #tpu.pipeline_mode<synchronous>, transform_indices = @transform_2, window_bounds = array<i64: 1, 16>}, {transform_indices = @transform_3, window_bounds = array<i64: 24, 16>}]} {
    %c0 = arith.constant 0 : index
    %c0_0 = arith.constant 0 : index
    %0 = vector.load %arg1[%c0, %c0_0] : memref<24x128xf32, #tpu.memory_space<vmem>>, vector<24x128xf32>
    %c0_1 = arith.constant 0 : index
    %c0_2 = arith.constant 0 : index
    %1 = vector.load %arg2[%c0_1, %c0_2] : memref<128x16xf32, #tpu.memory_space<vmem>>, vector<128x16xf32>
    %cst = arith.constant dense<0.000000e+00> : vector<24x16xf32>
    %2 = tpu.matmul %0, %1, %cst {dimension_numbers = #tpu.dot_dimension_numbers<[1], [0], [0], [1], [0, 0, 1, 1], [], []>} : vector<24x128xf32>, vector<128x16xf32>, vector<24x16xf32> -> vector<24x16xf32>
    %c0_3 = arith.constant 0 : index
    %c0_4 = arith.constant 0 : index
    %3 = vector.load %arg3[%c0_3, %c0_4] : memref<1x16xf32, #tpu.memory_space<vmem>>, vector<1x16xf32>
    %4 = vector.broadcast %3 : vector<1x16xf32> to vector<24x16xf32>
    %5 = arith.addf %2, %4 : vector<24x16xf32>
    %cst_5 = arith.constant dense<0xFF800000> : vector<24xf32>
    %6 = vector.multi_reduction <maximumf>, %5, %cst_5 [1] : vector<24x16xf32> to vector<24xf32>
    %7 = vector.shape_cast %6 : vector<24xf32> to vector<24x1xf32>
    %8 = vector.broadcast %7 : vector<24x1xf32> to vector<24x16xf32>
    %9 = arith.subf %5, %8 : vector<24x16xf32>
    %10 = math.exp %9 : vector<24x16xf32>
    %cst_6 = arith.constant dense<0.000000e+00> : vector<24xf32>
    %11 = vector.multi_reduction <add>, %10, %cst_6 [1] : vector<24x16xf32> to vector<24xf32>
    %12 = vector.shape_cast %11 : vector<24xf32> to vector<24x1xf32>
    %13 = vector.broadcast %12 : vector<24x1xf32> to vector<24x16xf32>
    %14 = arith.divf %10, %13 : vector<24x16xf32>
    %c0_7 = arith.constant 0 : index
    %c0_8 = arith.constant 0 : index
    %15 = vector.load %arg4[%c0_7, %c0_8] : memref<24x16xf32, #tpu.memory_space<vmem>>, vector<24x16xf32>
    tpu.vector_store %arg4[%c0_7, %c0_8], %14 {strides = array<i32>} : memref<24x16xf32, #tpu.memory_space<vmem>>, vector<24x16xf32>,
    return
  }
  func.func @transform_0(%arg0: i32) -> (i32, i32) {
    %c0_i32 = arith.constant 0 : i32
    %c0_i32_0 = arith.constant 0 : i32
    return %arg0, %c0_i32 : i32, i32
  }
  func.func @transform_1(%arg0: i32) -> (i32, i32) {
    %c0_i32 = arith.constant 0 : i32
    %c0_i32_0 = arith.constant 0 : i32
    %c0_i32_1 = arith.constant 0 : i32
    return %c0_i32, %c0_i32_0 : i32, i32
  }
  func.func @transform_2(%arg0: i32) -> (i32, i32) {
    %c0_i32 = arith.constant 0 : i32
    %c0_i32_0 = arith.constant 0 : i32
    %c0_i32_1 = arith.constant 0 : i32
    return %c0_i32, %c0_i32_0 : i32, i32
  }
  func.func @transform_3(%arg0: i32) -> (i32, i32) {
    %c0_i32 = arith.constant 0 : i32
    %c0_i32_0 = arith.constant 0 : i32
    return %arg0, %c0_i32 : i32, i32
  }
}

</mosaic_0001>

<bundles_post_ra>
// kernel: tpu_custom_call.1
= control target key start
LH: loop header
LB: loop body
LE: loop exit
PB: predicated region body
PF: predicated region fallthrough
CT: control target
= control target key end

     0   :  { %v268_v0 = vmov 0.0   ;;  %vm269_vm0 = vmmov 0   ;;  %vm120_vm1 = vcmask 130048   ;;  %s403_s1 = inlined_call_operand.vmem [shape: f32[128,16], index: 1, kind: input, shape index: {}]   ;;  %s404_s0 = inlined_call_operand.vmem [shape: f32[20,128], index: 0, kind: input, shape index: {}]   ;;  %s405_s2 = inlined_call_operand.vmem [shape: f32[1,16], index: 2, kind: input, shape index: {}]   ;;  %s406_s3 = inlined_call_operand.vmem [shape: f32[20,16], index: 3, kind: output, shape index: {}]  }
   0x1   :  { %181 = vmatprep.subr.mxu0 %v268_v0  ;;  %222 = vmatprep.subr.mxu1 %v268_v0  ;;  %v32_v1 = vld [vmem:[%s403_s1 + $0x78] sm:$0xff]  ;;  %v31_v2 = vld [vmem:[%s403_s1 + $0x70] sm:$0xff]  ;;  %v30_v3 = vld [vmem:[%s403_s1 + $0x68] sm:$0xff] }
   0x2   :  { %182 = vmatpush3.msra.mxu0 %v32_v1  ;;  %238 = vmatpush3.msra.mxu1 %v32_v1  ;;  %v29_v4 = vld [vmem:[%s403_s1 + $0x60] sm:$0xff]  ;;  %v28_v5 = vld [vmem:[%s403_s1 + $0x58] sm:$0xff]  ;;  %v27_v6 = vld [vmem:[%s403_s1 + $0x50] sm:$0xff] }
   0x3   :  { %183 = vmatprep.subr.mxu0 %v268_v0  ;;  %223 = vmatprep.subr.mxu1 %v268_v0  ;;  %v26_v7 = vld [vmem:[%s403_s1 + $0x48] sm:$0xff]  ;;  %v25_v8 = vld [vmem:[%s403_s1 + $0x40] sm:$0xff]  ;;  %v24_v9 = vld [vmem:[%s403_s1 + $0x38] sm:$0xff] }
   0x4   :  { %184 = vmatpush3.msra.mxu0 %v31_v2  ;;  %239 = vmatpush3.msra.mxu1 %v31_v2  ;;  %v23_v10 = vld [vmem:[%s403_s1 + $0x30] sm:$0xff]  ;;  %v22_v11 = vld [vmem:[%s403_s1 + $0x28] sm:$0xff]  ;;  %v21_v12 = vld [vmem:[%s403_s1 + $0x20] sm:$0xff] }
   0x5   :  { %185 = vmatprep.subr.mxu0 %v268_v0  ;;  %224 = vmatprep.subr.mxu1 %v268_v0  ;;  %v20_v13 = vld [vmem:[%s403_s1 + $0x18] sm:$0xff]  ;;  %v19_v14 = vld [vmem:[%s403_s1 + $0x10] sm:$0xff]  ;;  %v18_v15 = vld [vmem:[%s403_s1 + $0x8] sm:$0xff] }
   0x6   :  { %186 = vmatpush3.msra.mxu0 %v30_v3  ;;  %240 = vmatpush3.msra.mxu1 %v30_v3  ;;  %v17_v16 = vld [vmem:[%s403_s1] sm:$0xff]  ;;  %v15_v18 = vld [vmem:[%s404_s0 + $0x8] sm:$0xff]  ;;  %v16_v19 = vld [vmem:[%s404_s0 + $0x10] sm:$0xff] }
   0x7   :  { %187 = vmatprep.subr.mxu0 %v268_v0  ;;  %225 = vmatprep.subr.mxu1 %v268_v0  ;;  %v14_v17 = vld [vmem:[%s404_s0] sm:$0xff] }
   0x8   :  { %188 = vmatpush3.msra.mxu0 %v29_v4  ;;  %241 = vmatpush3.msra.mxu1 %v29_v4  ;;  %v161_v20 = vld [vmem:[%s405_s2] ss:$0 sm:$0xff] }
   0x9   :  { %189 = vmatprep.subr.mxu0 %v268_v0  ;;  %226 = vmatprep.subr.mxu1 %v268_v0 }
   0xa   :  { %190 = vmatpush3.msra.mxu0 %v28_v5  ;;  %242 = vmatpush3.msra.mxu1 %v28_v5 }
   0xb   :  { %191 = vmatprep.subr.mxu0 %v268_v0  ;;  %227 = vmatprep.subr.mxu1 %v268_v0 }
   0xc   :  { %192 = vmatpush3.msra.mxu0 %v27_v6  ;;  %243 = vmatpush3.msra.mxu1 %v27_v6 }
   0xd   :  { %193 = vmatprep.subr.mxu0 %v268_v0  ;;  %228 = vmatprep.subr.mxu1 %v268_v0 }
   0xe   :  { %194 = vmatpush3.msra.mxu0 %v26_v7  ;;  %244 = vmatpush3.msra.mxu1 %v26_v7 }
   0xf   :  { %195 = vmatprep.subr.mxu0 %v268_v0  ;;  %229 = vmatprep.subr.mxu1 %v268_v0 }
  0x10   :  { %196 = vmatpush3.msra.mxu0 %v25_v8  ;;  %245 = vmatpush3.msra.mxu1 %v25_v8 }
  0x11   :  { %197 = vmatprep.subr.mxu0 %v268_v0  ;;  %230 = vmatprep.subr.mxu1 %v268_v0 }
  0x12   :  { %198 = vmatpush3.msra.mxu0 %v24_v9  ;;  %246 = vmatpush3.msra.mxu1 %v24_v9 }
  0x13   :  { %199 = vmatprep.subr.mxu0 %v268_v0  ;;  %231 = vmatprep.subr.mxu1 %v268_v0 }
  0x14   :  { %200 = vmatpush3.msra.mxu0 %v23_v10  ;;  %247 = vmatpush3.msra.mxu1 %v23_v10 }
  0x15   :  { %201 = vmatprep.subr.mxu0 %v268_v0  ;;  %232 = vmatprep.subr.mxu1 %v268_v0 }
  0x16   :  { %202 = vmatpush3.msra.mxu0 %v22_v11  ;;  %248 = vmatpush3.msra.mxu1 %v22_v11 }
  0x17   :  { %203 = vmatprep.subr.mxu0 %v268_v0  ;;  %233 = vmatprep.subr.mxu1 %v268_v0 }
  0x18   :  { %204 = vmatpush3.msra.mxu0 %v21_v12  ;;  %249 = vmatpush3.msra.mxu1 %v21_v12 }
  0x19   :  { %205 = vmatprep.subr.mxu0 %v268_v0  ;;  %234 = vmatprep.subr.mxu1 %v268_v0 }
  0x1a   :  { %206 = vmatpush3.msra.mxu0 %v20_v13  ;;  %250 = vmatpush3.msra.mxu1 %v20_v13 }
  0x1b   :  { %207 = vmatprep.subr.mxu0 %v268_v0  ;;  %235 = vmatprep.subr.mxu1 %v268_v0 }
  0x1c   :  { %208 = vmatpush3.msra.mxu0 %v19_v14  ;;  %251 = vmatpush3.msra.mxu1 %v19_v14 }
  0x1d   :  { %209 = vmatprep.subr.mxu0 %v268_v0  ;;  %236 = vmatprep.subr.mxu1 %v268_v0 }
  0x1e   :  { %210 = vmatpush3.msra.mxu0 %v18_v15  ;;  %252 = vmatpush3.msra.mxu1 %v18_v15 }
  0x1f   :  { %211 = vmatprep.subr.mxu0 %v268_v0  ;;  %237 = vmatprep.subr.mxu1 %v268_v0 }
  0x20   :  { %212 = vmatpush3.msra.mxu0 %v17_v16  ;;  %253 = vmatpush3.msra.mxu1 %v17_v16 }
  0x21   :  { %213 = vmatprep.mubr.msk.f32.mxu0 %vm269_vm0, %v268_v0  ;;  %216 = vmatprep.mubr.msk.f32.mxu1 %vm269_vm0, %v268_v0 }
  0x22   :  { %214 = vmatmul.mubr.f32.vlgmr.msra.gmra.mxu0 %v14_v17  ;;  %217 = vmatmul.mubr.f32.vlgmr.msra.gmra.mxu1 %v15_v18 }
  0x23   :  { %219 = vmatprep.mubr.msk.f32.mxu1 %vm269_vm0, %v268_v0 }
  0x26   :  { %220 = vmatmul.mubr.f32.gmra.mxu1 %v16_v19 }
  0xe2   :  { %v106_v21 = vpop.f32.mrf.mxu0  ;;  %v111_v22 = vpop.f32.mrf.mxu1 }
  0xe3   :  { %v107_v23 = vadd.f32 %v161_v20, %v106_v21  ;;  %v112_v26 = vadd.f32 %v161_v20, %v111_v22 }
  0xe4   :  { %v215_v24 = vpop.f32.mrf.mxu0  ;;  %v218_v25 = vpop.f32.mrf.mxu1 }
  0xe5   :  { %v121_v27 = vsel %vm120_vm1, %v107_v23, -inf  ;;  %v124_v32 = vsel %vm120_vm1, %v112_v26, -inf }
  0xe6   :  { %v116_v28 = vpop.f32.mrf.mxu1  ;;  %122 = vmax.xlane.f32.xlu0 %v121_v27 }
  0xe7   :  { %v117_v29 = vadd.f32 %v161_v20, %v116_v28 }
  0xe8   :  { %v221_v30 = vpop.f32.mrf.mxu1 }
  0xe9   :  { %v127_v31 = vsel %vm120_vm1, %v117_v29, -inf }
  0xea   :  { %128 = vmax.xlane.f32.xlu1 %v127_v31  ;;  %125 = vmax.xlane.f32.xlu0 %v124_v32 }
 0x16f   :  { %v123_v33 = vpop.xlane.xlu0 %122 }
 0x170   :  { %v130_v34 = vsub.f32 %v107_v23, %v123_v33 }
 0x172   :  { %v133_v35 = vmul.f32 1.442695, %v130_v34 }
 0x173   :  { %v129_v36 = vpop.xlane.xlu1 %128  ;;  %v126_v37 = vpop.xlane.xlu0 %125 }
 0x174   :  { %256 = vpow2.f32 %v133_v35  ;;  %v132_v38 = vsub.f32 %v117_v29, %v129_v36  ;;  %v131_v39 = vsub.f32 %v112_v26, %v126_v37 }
 0x176   :  { %v137_v40 = vmul.f32 1.442695, %v132_v38  ;;  %v135_v41 = vmul.f32 1.442695, %v131_v39 }
 0x178   :  { %258 = vpow2.f32 %v137_v40 }
 0x179   :  { %260 = vpow2.f32 %v135_v41 }
 0x181   :  { %v257_v42 = vpop.eup %256 }
 0x182   :  { %v139_v43 = vsel %vm120_vm1, %v257_v42, 0.0 }
 0x183   :  { %140 = vadd.xlane.f32.xlu1 %v139_v43 }
 0x185   :  { %v259_v44 = vpop.eup %258 }
 0x186   :  { %v261_v45 = vpop.eup %260  ;;  %v145_v46 = vsel %vm120_vm1, %v259_v44, 0.0 }
 0x187   :  { %146 = vadd.xlane.f32.xlu1 %v145_v46  ;;  %v142_v47 = vsel %vm120_vm1, %v261_v45, 0.0 }
 0x188   :  { %143 = vadd.xlane.f32.xlu0 %v142_v47 }
 0x20c   :  { %v141_v48 = vpop.xlane.xlu1 %140 }
 0x20d   :  { %262 = vrcp.f32 %v141_v48 }
 0x210   :  { %v147_v49 = vpop.xlane.xlu1 %146 }
 0x211   :  { %264 = vrcp.f32 %v147_v49  ;;  %v144_v50 = vpop.xlane.xlu0 %143 }
 0x212   :  { %266 = vrcp.f32 %v144_v50 }
 0x21a   :  { %v263_v51 = vpop.eup %262 }
 0x21b   :  { %v149_v52 = vmul.f32 %v263_v51, %v257_v42 }
 0x21d   :  { %154 = vst.msk [vmem:[%s406_s3] sm:$0xff] %vm120_vm1, %v149_v52 }
 0x21e   :  { %v265_v53 = vpop.eup %264 }
 0x21f   :  { %v267_v54 = vpop.eup %266  ;;  %v153_v55 = vmul.f32 %v265_v53, %v259_v44 }
 0x220   :  { %v151_v56 = vmul.f32 %v267_v54, %v261_v45 }
 0x221   :  { %156 = vst.msk [vmem:[%s406_s3 + $0x10] sm:$0xff] %vm120_vm1, %v153_v55 }
 0x222   :  { %155 = vst.msk [vmem:[%s406_s3 + $0x8] sm:$0xff] %vm120_vm1, %v151_v56 }

</bundles_post_ra>
